<compile_context>
chip_gen: v7x
topology: tpu7x:2x2x1
jax: 0.10.0
libtpu: 0.0.40
codegen_flags: <defaults>
</compile_context>

<pallas_src>
import jax
import jax.numpy as jnp
from jax import lax
from jax.experimental import pallas as pl
from jax.experimental.pallas import tpu as pltpu

# ---- small synthetic config (consistent with the module's __init__) ----
HIDDEN_DIM = 32      # hidden_dim
EMBED_DIM = 16       # embedding_dim
VOCAB_SIZE = 128     # target_vocab.vocab_size
BATCH = 2
MAX_STEPS = 8        # fixed decode length (stand-in for EOS loop)
SOS_IDX = 1
EOS_IDX = 2          # unused without dynamic early-stop


def rnn_decoder_kernel(emb_wi_ref, b_rec_ref, wh_ref, wo_ref, bo_ref,
                       h0_ref, out_ref):
    """Runs the full sequential decode loop on-chip.

    emb_wi_ref: (V, H)  embedding table folded through i2h (emb @ wi)
    b_rec_ref : (1, H)  combined recurrent bias (bi + bh)
    wh_ref    : (H, H)  h2h weight
    wo_ref    : (H, V)  h2o weight      bo_ref: (1, V)
    h0_ref    : (B, H)  encoder_last_hidden
    out_ref   : (B, T, V) decoder logits per step
    """
    B, H = h0_ref.shape
    V = emb_wi_ref.shape[0]
    T = out_ref.shape[1]

    emb_wi = emb_wi_ref[...]
    b_rec = b_rec_ref[...]
    wh = wh_ref[...]
    wo = wo_ref[...]
    bo = bo_ref[...]
    h = h0_ref[...]

    lane_iota = lax.broadcasted_iota(jnp.int32, (B, V), 1)

    # x0 = embedding(SOS) broadcast over the batch, represented as one-hot(SOS)
    # (i2h(emb[idx]) == onehot(idx) @ emb_wi).
    onehot = (lane_iota == SOS_IDX).astype(jnp.float32)                # (B, V)

    ys = []
    # T is static: full Python unroll -> static indices, LLO sees across steps.
    for _ in range(T):
        # RNNManual cell, split into two dots so h@wh (K=H=32) can issue
        # off the argmax critical path and every contraction stays <= 128.
        h = jnp.tanh(
            jnp.dot(onehot, emb_wi, preferred_element_type=jnp.float32)
            + jnp.dot(h, wh, preferred_element_type=jnp.float32)
            + b_rec)                                                    # (B, H)
        # h2o linear -> logits.
        y = jnp.dot(h, wo, preferred_element_type=jnp.float32) + bo    # (B, V)
        ys.append(y)

        # Greedy feedback: per-batch argmax over vocab on the raw logits
        # (log_softmax is argmax-invariant).  First-occurrence tie-break.
        maxv = jnp.max(y, axis=-1, keepdims=True)
        cand = jnp.where(y == maxv, lane_iota, V)
        pred = jnp.min(cand, axis=-1)                                  # (B,)
        onehot = (lane_iota == pred[:, None]).astype(jnp.float32)

    # One full-tile (B, T, V) store: (8, 128) = one f32 tile per batch row,
    # unmasked, and all per-step y's stay in vregs until here.
    out_ref[...] = jnp.stack(ys, axis=1)


def rnn_decoder(emb, wi, bi, wh, bh, wo, bo, h0, max_steps=MAX_STEPS):
    B = h0.shape[0]
    V = emb.shape[0]
    # One-time folds hoisted out of the kernel (reusable across calls):
    #   i2h folded through the embedding, and the combined recurrent bias.
    emb_wi = jnp.dot(emb, wi, preferred_element_type=jnp.float32)      # (V, H)
    b_rec = bi + bh                                                    # (1, H)

    vmem = pl.BlockSpec(memory_space=pltpu.MemorySpace.VMEM)
    return pl.pallas_call(
        rnn_decoder_kernel,
        out_shape=jax.ShapeDtypeStruct((B, max_steps, V), jnp.float32),
        in_specs=[vmem] * 6,
        out_specs=vmem,
    )(emb_wi, b_rec, wh, wo, bo, h0)


def rnn_decoder_ref(emb, wi, bi, wh, bh, wo, bo, h0, max_steps=MAX_STEPS):
    """Pure-JAX reference for correctness checking (mirrors module semantics)."""
    B = h0.shape[0]
    x = jnp.broadcast_to(emb[SOS_IDX][None, :], (B, emb.shape[1]))
    h = h0
    ys = []
    for _ in range(max_steps):
        h = jnp.tanh(x @ wi + bi + h @ wh + bh)
        y = h @ wo + bo
        ys.append(y)
        pred = jnp.argmax(jax.nn.log_softmax(y, axis=-1), axis=-1)
        x = emb[pred]
    return jnp.stack(ys, axis=1)


if __name__ == "__main__":
    key = jax.random.PRNGKey(0)
    keys = jax.random.split(key, 8)

    # deterministic parameter init (shapes from RNNDecoder.__init__)
    emb = jax.random.normal(keys[0], (VOCAB_SIZE, EMBED_DIM), jnp.float32) * 0.1
    wi = jax.random.normal(keys[1], (EMBED_DIM, HIDDEN_DIM), jnp.float32) * 0.1
    bi = jax.random.normal(keys[2], (1, HIDDEN_DIM), jnp.float32) * 0.1
    wh = jax.random.normal(keys[3], (HIDDEN_DIM, HIDDEN_DIM), jnp.float32) * 0.1
    bh = jax.random.normal(keys[4], (1, HIDDEN_DIM), jnp.float32) * 0.1
    wo = jax.random.normal(keys[5], (HIDDEN_DIM, VOCAB_SIZE), jnp.float32) * 0.1
    bo = jax.random.normal(keys[6], (1, VOCAB_SIZE), jnp.float32) * 0.1

    # encoder_last_hidden: (batch, hidden_dim)
    h0 = jax.random.normal(keys[7], (BATCH, HIDDEN_DIM), jnp.float32)

    out = jax.block_until_ready(
        rnn_decoder(emb, wi, bi, wh, bh, wo, bo, h0))
    ref = rnn_decoder_ref(emb, wi, bi, wh, bh, wo, bo, h0)

    assert out.shape == (BATCH, MAX_STEPS, VOCAB_SIZE), out.shape
    assert jnp.allclose(out, ref, rtol=1e-4, atol=1e-4), \
        float(jnp.max(jnp.abs(out - ref)))
    print("KERNEL_OK")
</pallas_src>

<mosaic_0001>
module attributes {stable_mosaic.version = 11 : i64} {
  func.func @rnn_decoder_kernel(%arg0: memref<128x32xf32, #tpu.memory_space<vmem>>, %arg1: memref<1x32xf32, #tpu.memory_space<vmem>>, %arg2: memref<32x32xf32, #tpu.memory_space<vmem>>, %arg3: memref<32x128xf32, #tpu.memory_space<vmem>>, %arg4: memref<1x128xf32, #tpu.memory_space<vmem>>, %arg5: memref<2x32xf32, #tpu.memory_space<vmem>>, %arg6: memref<2x8x128xf32, #tpu.memory_space<vmem>>) attributes {dimension_semantics = [], scalar_prefetch = 0 : i64, scratch_operands = 0 : i64, tpu.core_type = #tpu.core_type<tc>} {
    %c0 = arith.constant 0 : index
    %c0_0 = arith.constant 0 : index
    %0 = vector.load %arg0[%c0, %c0_0] : memref<128x32xf32, #tpu.memory_space<vmem>>, vector<128x32xf32>
    %c0_1 = arith.constant 0 : index
    %c0_2 = arith.constant 0 : index
    %1 = vector.load %arg1[%c0_1, %c0_2] : memref<1x32xf32, #tpu.memory_space<vmem>>, vector<1x32xf32>
    %c0_3 = arith.constant 0 : index
    %c0_4 = arith.constant 0 : index
    %2 = vector.load %arg2[%c0_3, %c0_4] : memref<32x32xf32, #tpu.memory_space<vmem>>, vector<32x32xf32>
    %c0_5 = arith.constant 0 : index
    %c0_6 = arith.constant 0 : index
    %3 = vector.load %arg3[%c0_5, %c0_6] : memref<32x128xf32, #tpu.memory_space<vmem>>, vector<32x128xf32>
    %c0_7 = arith.constant 0 : index
    %c0_8 = arith.constant 0 : index
    %4 = vector.load %arg4[%c0_7, %c0_8] : memref<1x128xf32, #tpu.memory_space<vmem>>, vector<1x128xf32>
    %c0_9 = arith.constant 0 : index
    %c0_10 = arith.constant 0 : index
    %5 = vector.load %arg5[%c0_9, %c0_10] : memref<2x32xf32, #tpu.memory_space<vmem>>, vector<2x32xf32>
    %6 = tpu.iota {dimensions = array<i32: 1>} : vector<2x128xi32>
    %c1_i32 = arith.constant 1 : i32
    %7 = vector.broadcast %c1_i32 : i32 to vector<2x128xi32>
    %8 = arith.cmpi eq, %6, %7 : vector<2x128xi32>
    %9 = arith.extui %8 : vector<2x128xi1> to vector<2x128xi32>
    %10 = arith.sitofp %9 : vector<2x128xi32> to vector<2x128xf32>
    %cst = arith.constant dense<0.000000e+00> : vector<2x32xf32>
    %11 = tpu.matmul %10, %0, %cst {dimension_numbers = #tpu.dot_dimension_numbers<[1], [0], [0], [1], [0, 0, 1, 1], [], []>} : vector<2x128xf32>, vector<128x32xf32>, vector<2x32xf32> -> vector<2x32xf32>
    %cst_11 = arith.constant dense<0.000000e+00> : vector<2x32xf32>
    %12 = tpu.matmul %5, %2, %cst_11 {dimension_numbers = #tpu.dot_dimension_numbers<[1], [0], [0], [1], [0, 0, 1, 1], [], []>} : vector<2x32xf32>, vector<32x32xf32>, vector<2x32xf32> -> vector<2x32xf32>
    %13 = arith.addf %11, %12 : vector<2x32xf32>
    %14 = vector.broadcast %1 : vector<1x32xf32> to vector<2x32xf32>
    %15 = arith.addf %13, %14 : vector<2x32xf32>
    %16 = math.tanh %15 : vector<2x32xf32>
    %cst_12 = arith.constant dense<0.000000e+00> : vector<2x128xf32>
    %17 = tpu.matmul %16, %3, %cst_12 {dimension_numbers = #tpu.dot_dimension_numbers<[1], [0], [0], [1], [0, 0, 1, 1], [], []>} : vector<2x32xf32>, vector<32x128xf32>, vector<2x128xf32> -> vector<2x128xf32>
    %18 = vector.broadcast %4 : vector<1x128xf32> to vector<2x128xf32>
    %19 = arith.addf %17, %18 : vector<2x128xf32>
    %cst_13 = arith.constant dense<0xFF800000> : vector<2xf32>
    %20 = vector.multi_reduction <maximumf>, %19, %cst_13 [1] : vector<2x128xf32> to vector<2xf32>
    %21 = vector.shape_cast %20 : vector<2xf32> to vector<2x1xf32>
    %22 = vector.broadcast %21 : vector<2x1xf32> to vector<2x128xf32>
    %23 = arith.cmpf oeq, %19, %22 : vector<2x128xf32>
    %c128_i32 = arith.constant 128 : i32
    %24 = vector.broadcast %c128_i32 : i32 to vector<2x128xi32>
    %25 = arith.select %23, %6, %24 : vector<2x128xi1>, vector<2x128xi32>
    %cst_14 = arith.constant dense<2147483647> : vector<2xi32>
    %26 = vector.multi_reduction <minsi>, %25, %cst_14 [1] : vector<2x128xi32> to vector<2xi32>
    %27 = vector.shape_cast %26 : vector<2xi32> to vector<2x1xi32>
    %28 = vector.broadcast %27 : vector<2x1xi32> to vector<2x128xi32>
    %29 = arith.cmpi eq, %6, %28 : vector<2x128xi32>
    %30 = arith.extui %29 : vector<2x128xi1> to vector<2x128xi32>
    %31 = arith.sitofp %30 : vector<2x128xi32> to vector<2x128xf32>
    %cst_15 = arith.constant dense<0.000000e+00> : vector<2x32xf32>
    %32 = tpu.matmul %31, %0, %cst_15 {dimension_numbers = #tpu.dot_dimension_numbers<[1], [0], [0], [1], [0, 0, 1, 1], [], []>} : vector<2x128xf32>, vector<128x32xf32>, vector<2x32xf32> -> vector<2x32xf32>
    %cst_16 = arith.constant dense<0.000000e+00> : vector<2x32xf32>
    %33 = tpu.matmul %16, %2, %cst_16 {dimension_numbers = #tpu.dot_dimension_numbers<[1], [0], [0], [1], [0, 0, 1, 1], [], []>} : vector<2x32xf32>, vector<32x32xf32>, vector<2x32xf32> -> vector<2x32xf32>
    %34 = arith.addf %32, %33 : vector<2x32xf32>
    %35 = vector.broadcast %1 : vector<1x32xf32> to vector<2x32xf32>
    %36 = arith.addf %34, %35 : vector<2x32xf32>
    %37 = math.tanh %36 : vector<2x32xf32>
    %cst_17 = arith.constant dense<0.000000e+00> : vector<2x128xf32>
    %38 = tpu.matmul %37, %3, %cst_17 {dimension_numbers = #tpu.dot_dimension_numbers<[1], [0], [0], [1], [0, 0, 1, 1], [], []>} : vector<2x32xf32>, vector<32x128xf32>, vector<2x128xf32> -> vector<2x128xf32>
    %39 = vector.broadcast %4 : vector<1x128xf32> to vector<2x128xf32>
    %40 = arith.addf %38, %39 : vector<2x128xf32>
    %cst_18 = arith.constant dense<0xFF800000> : vector<2xf32>
    %41 = vector.multi_reduction <maximumf>, %40, %cst_18 [1] : vector<2x128xf32> to vector<2xf32>
    %42 = vector.shape_cast %41 : vector<2xf32> to vector<2x1xf32>
    %43 = vector.broadcast %42 : vector<2x1xf32> to vector<2x128xf32>
    %44 = arith.cmpf oeq, %40, %43 : vector<2x128xf32>
    %c128_i32_19 = arith.constant 128 : i32
    %45 = vector.broadcast %c128_i32_19 : i32 to vector<2x128xi32>
    %46 = arith.select %44, %6, %45 : vector<2x128xi1>, vector<2x128xi32>
    %cst_20 = arith.constant dense<2147483647> : vector<2xi32>
    %47 = vector.multi_reduction <minsi>, %46, %cst_20 [1] : vector<2x128xi32> to vector<2xi32>
    %48 = vector.shape_cast %47 : vector<2xi32> to vector<2x1xi32>
    %49 = vector.broadcast %48 : vector<2x1xi32> to vector<2x128xi32>
    %50 = arith.cmpi eq, %6, %49 : vector<2x128xi32>
    %51 = arith.extui %50 : vector<2x128xi1> to vector<2x128xi32>
    %52 = arith.sitofp %51 : vector<2x128xi32> to vector<2x128xf32>
    %cst_21 = arith.constant dense<0.000000e+00> : vector<2x32xf32>
    %53 = tpu.matmul %52, %0, %cst_21 {dimension_numbers = #tpu.dot_dimension_numbers<[1], [0], [0], [1], [0, 0, 1, 1], [], []>} : vector<2x128xf32>, vector<128x32xf32>, vector<2x32xf32> -> vector<2x32xf32>
    %cst_22 = arith.constant dense<0.000000e+00> : vector<2x32xf32>
    %54 = tpu.matmul %37, %2, %cst_22 {dimension_numbers = #tpu.dot_dimension_numbers<[1], [0], [0], [1], [0, 0, 1, 1], [], []>} : vector<2x32xf32>, vector<32x32xf32>, vector<2x32xf32> -> vector<2x32xf32>
    %55 = arith.addf %53, %54 : vector<2x32xf32>
    %56 = vector.broadcast %1 : vector<1x32xf32> to vector<2x32xf32>
    %57 = arith.addf %55, %56 : vector<2x32xf32>
    %58 = math.tanh %57 : vector<2x32xf32>
    %cst_23 = arith.constant dense<0.000000e+00> : vector<2x128xf32>
    %59 = tpu.matmul %58, %3, %cst_23 {dimension_numbers = #tpu.dot_dimension_numbers<[1], [0], [0], [1], [0, 0, 1, 1], [], []>} : vector<2x32xf32>, vector<32x128xf32>, vector<2x128xf32> -> vector<2x128xf32>
    %60 = vector.broadcast %4 : vector<1x128xf32> to vector<2x128xf32>
    %61 = arith.addf %59, %60 : vector<2x128xf32>
    %cst_24 = arith.constant dense<0xFF800000> : vector<2xf32>
    %62 = vector.multi_reduction <maximumf>, %61, %cst_24 [1] : vector<2x128xf32> to vector<2xf32>
    %63 = vector.shape_cast %62 : vector<2xf32> to vector<2x1xf32>
    %64 = vector.broadcast %63 : vector<2x1xf32> to vector<2x128xf32>
    %65 = arith.cmpf oeq, %61, %64 : vector<2x128xf32>
    %c128_i32_25 = arith.constant 128 : i32
    %66 = vector.broadcast %c128_i32_25 : i32 to vector<2x128xi32>
    %67 = arith.select %65, %6, %66 : vector<2x128xi1>, vector<2x128xi32>
    %cst_26 = arith.constant dense<2147483647> : vector<2xi32>
    %68 = vector.multi_reduction <minsi>, %67, %cst_26 [1] : vector<2x128xi32> to vector<2xi32>
    %69 = vector.shape_cast %68 : vector<2xi32> to vector<2x1xi32>
    %70 = vector.broadcast %69 : vector<2x1xi32> to vector<2x128xi32>
    %71 = arith.cmpi eq, %6, %70 : vector<2x128xi32>
    %72 = arith.extui %71 : vector<2x128xi1> to vector<2x128xi32>
    %73 = arith.sitofp %72 : vector<2x128xi32> to vector<2x128xf32>
    %cst_27 = arith.constant dense<0.000000e+00> : vector<2x32xf32>
    %74 = tpu.matmul %73, %0, %cst_27 {dimension_numbers = #tpu.dot_dimension_numbers<[1], [0], [0], [1], [0, 0, 1, 1], [], []>} : vector<2x128xf32>, vector<128x32xf32>, vector<2x32xf32> -> vector<2x32xf32>
    %cst_28 = arith.constant dense<0.000000e+00> : vector<2x32xf32>
    %75 = tpu.matmul %58, %2, %cst_28 {dimension_numbers = #tpu.dot_dimension_numbers<[1], [0], [0], [1], [0, 0, 1, 1], [], []>} : vector<2x32xf32>, vector<32x32xf32>, vector<2x32xf32> -> vector<2x32xf32>
    %76 = arith.addf %74, %75 : vector<2x32xf32>
    %77 = vector.broadcast %1 : vector<1x32xf32> to vector<2x32xf32>
    %78 = arith.addf %76, %77 : vector<2x32xf32>
    %79 = math.tanh %78 : vector<2x32xf32>
    %cst_29 = arith.constant dense<0.000000e+00> : vector<2x128xf32>
    %80 = tpu.matmul %79, %3, %cst_29 {dimension_numbers = #tpu.dot_dimension_numbers<[1], [0], [0], [1], [0, 0, 1, 1], [], []>} : vector<2x32xf32>, vector<32x128xf32>, vector<2x128xf32> -> vector<2x128xf32>
    %81 = vector.broadcast %4 : vector<1x128xf32> to vector<2x128xf32>
    %82 = arith.addf %80, %81 : vector<2x128xf32>
    %cst_30 = arith.constant dense<0xFF800000> : vector<2xf32>
    %83 = vector.multi_reduction <maximumf>, %82, %cst_30 [1] : vector<2x128xf32> to vector<2xf32>
    %84 = vector.shape_cast %83 : vector<2xf32> to vector<2x1xf32>
    %85 = vector.broadcast %84 : vector<2x1xf32> to vector<2x128xf32>
    %86 = arith.cmpf oeq, %82, %85 : vector<2x128xf32>
    %c128_i32_31 = arith.constant 128 : i32
    %87 = vector.broadcast %c128_i32_31 : i32 to vector<2x128xi32>
    %88 = arith.select %86, %6, %87 : vector<2x128xi1>, vector<2x128xi32>
    %cst_32 = arith.constant dense<2147483647> : vector<2xi32>
    %89 = vector.multi_reduction <minsi>, %88, %cst_32 [1] : vector<2x128xi32> to vector<2xi32>
    %90 = vector.shape_cast %89 : vector<2xi32> to vector<2x1xi32>
    %91 = vector.broadcast %90 : vector<2x1xi32> to vector<2x128xi32>
    %92 = arith.cmpi eq, %6, %91 : vector<2x128xi32>
    %93 = arith.extui %92 : vector<2x128xi1> to vector<2x128xi32>
    %94 = arith.sitofp %93 : vector<2x128xi32> to vector<2x128xf32>
    %cst_33 = arith.constant dense<0.000000e+00> : vector<2x32xf32>
    %95 = tpu.matmul %94, %0, %cst_33 {dimension_numbers = #tpu.dot_dimension_numbers<[1], [0], [0], [1], [0, 0, 1, 1], [], []>} : vector<2x128xf32>, vector<128x32xf32>, vector<2x32xf32> -> vector<2x32xf32>
    %cst_34 = arith.constant dense<0.000000e+00> : vector<2x32xf32>
    %96 = tpu.matmul %79, %2, %cst_34 {dimension_numbers = #tpu.dot_dimension_numbers<[1], [0], [0], [1], [0, 0, 1, 1], [], []>} : vector<2x32xf32>, vector<32x32xf32>, vector<2x32xf32> -> vector<2x32xf32>
    %97 = arith.addf %95, %96 : vector<2x32xf32>
    %98 = vector.broadcast %1 : vector<1x32xf32> to vector<2x32xf32>
    %99 = arith.addf %97, %98 : vector<2x32xf32>
    %100 = math.tanh %99 : vector<2x32xf32>
    %cst_35 = arith.constant dense<0.000000e+00> : vector<2x128xf32>
    %101 = tpu.matmul %100, %3, %cst_35 {dimension_numbers = #tpu.dot_dimension_numbers<[1], [0], [0], [1], [0, 0, 1, 1], [], []>} : vector<2x32xf32>, vector<32x128xf32>, vector<2x128xf32> -> vector<2x128xf32>
    %102 = vector.broadcast %4 : vector<1x128xf32> to vector<2x128xf32>
    %103 = arith.addf %101, %102 : vector<2x128xf32>
    %cst_36 = arith.constant dense<0xFF800000> : vector<2xf32>
    %104 = vector.multi_reduction <maximumf>, %103, %cst_36 [1] : vector<2x128xf32> to vector<2xf32>
    %105 = vector.shape_cast %104 : vector<2xf32> to vector<2x1xf32>
    %106 = vector.broadcast %105 : vector<2x1xf32> to vector<2x128xf32>
    %107 = arith.cmpf oeq, %103, %106 : vector<2x128xf32>
    %c128_i32_37 = arith.constant 128 : i32
    %108 = vector.broadcast %c128_i32_37 : i32 to vector<2x128xi32>
    %109 = arith.select %107, %6, %108 : vector<2x128xi1>, vector<2x128xi32>
    %cst_38 = arith.constant dense<2147483647> : vector<2xi32>
    %110 = vector.multi_reduction <minsi>, %109, %cst_38 [1] : vector<2x128xi32> to vector<2xi32>
    %111 = vector.shape_cast %110 : vector<2xi32> to vector<2x1xi32>
    %112 = vector.broadcast %111 : vector<2x1xi32> to vector<2x128xi32>
    %113 = arith.cmpi eq, %6, %112 : vector<2x128xi32>
    %114 = arith.extui %113 : vector<2x128xi1> to vector<2x128xi32>
    %115 = arith.sitofp %114 : vector<2x128xi32> to vector<2x128xf32>
    %cst_39 = arith.constant dense<0.000000e+00> : vector<2x32xf32>
    %116 = tpu.matmul %115, %0, %cst_39 {dimension_numbers = #tpu.dot_dimension_numbers<[1], [0], [0], [1], [0, 0, 1, 1], [], []>} : vector<2x128xf32>, vector<128x32xf32>, vector<2x32xf32> -> vector<2x32xf32>
    %cst_40 = arith.constant dense<0.000000e+00> : vector<2x32xf32>
    %117 = tpu.matmul %100, %2, %cst_40 {dimension_numbers = #tpu.dot_dimension_numbers<[1], [0], [0], [1], [0, 0, 1, 1], [], []>} : vector<2x32xf32>, vector<32x32xf32>, vector<2x32xf32> -> vector<2x32xf32>
    %118 = arith.addf %116, %117 : vector<2x32xf32>
    %119 = vector.broadcast %1 : vector<1x32xf32> to vector<2x32xf32>
    %120 = arith.addf %118, %119 : vector<2x32xf32>
    %121 = math.tanh %120 : vector<2x32xf32>
    %cst_41 = arith.constant dense<0.000000e+00> : vector<2x128xf32>
    %122 = tpu.matmul %121, %3, %cst_41 {dimension_numbers = #tpu.dot_dimension_numbers<[1], [0], [0], [1], [0, 0, 1, 1], [], []>} : vector<2x32xf32>, vector<32x128xf32>, vector<2x128xf32> -> vector<2x128xf32>
    %123 = vector.broadcast %4 : vector<1x128xf32> to vector<2x128xf32>
    %124 = arith.addf %122, %123 : vector<2x128xf32>
    %cst_42 = arith.constant dense<0xFF800000> : vector<2xf32>
    %125 = vector.multi_reduction <maximumf>, %124, %cst_42 [1] : vector<2x128xf32> to vector<2xf32>
    %126 = vector.shape_cast %125 : vector<2xf32> to vector<2x1xf32>
    %127 = vector.broadcast %126 : vector<2x1xf32> to vector<2x128xf32>
    %128 = arith.cmpf oeq, %124, %127 : vector<2x128xf32>
    %c128_i32_43 = arith.constant 128 : i32
    %129 = vector.broadcast %c128_i32_43 : i32 to vector<2x128xi32>
    %130 = arith.select %128, %6, %129 : vector<2x128xi1>, vector<2x128xi32>
    %cst_44 = arith.constant dense<2147483647> : vector<2xi32>
    %131 = vector.multi_reduction <minsi>, %130, %cst_44 [1] : vector<2x128xi32> to vector<2xi32>
    %132 = vector.shape_cast %131 : vector<2xi32> to vector<2x1xi32>
    %133 = vector.broadcast %132 : vector<2x1xi32> to vector<2x128xi32>
    %134 = arith.cmpi eq, %6, %133 : vector<2x128xi32>
    %135 = arith.extui %134 : vector<2x128xi1> to vector<2x128xi32>
    %136 = arith.sitofp %135 : vector<2x128xi32> to vector<2x128xf32>
    %cst_45 = arith.constant dense<0.000000e+00> : vector<2x32xf32>
    %137 = tpu.matmul %136, %0, %cst_45 {dimension_numbers = #tpu.dot_dimension_numbers<[1], [0], [0], [1], [0, 0, 1, 1], [], []>} : vector<2x128xf32>, vector<128x32xf32>, vector<2x32xf32> -> vector<2x32xf32>
    %cst_46 = arith.constant dense<0.000000e+00> : vector<2x32xf32>
    %138 = tpu.matmul %121, %2, %cst_46 {dimension_numbers = #tpu.dot_dimension_numbers<[1], [0], [0], [1], [0, 0, 1, 1], [], []>} : vector<2x32xf32>, vector<32x32xf32>, vector<2x32xf32> -> vector<2x32xf32>
    %139 = arith.addf %137, %138 : vector<2x32xf32>
    %140 = vector.broadcast %1 : vector<1x32xf32> to vector<2x32xf32>
    %141 = arith.addf %139, %140 : vector<2x32xf32>
    %142 = math.tanh %141 : vector<2x32xf32>
    %cst_47 = arith.constant dense<0.000000e+00> : vector<2x128xf32>
    %143 = tpu.matmul %142, %3, %cst_47 {dimension_numbers = #tpu.dot_dimension_numbers<[1], [0], [0], [1], [0, 0, 1, 1], [], []>} : vector<2x32xf32>, vector<32x128xf32>, vector<2x128xf32> -> vector<2x128xf32>
    %144 = vector.broadcast %4 : vector<1x128xf32> to vector<2x128xf32>
    %145 = arith.addf %143, %144 : vector<2x128xf32>
    %cst_48 = arith.constant dense<0xFF800000> : vector<2xf32>
    %146 = vector.multi_reduction <maximumf>, %145, %cst_48 [1] : vector<2x128xf32> to vector<2xf32>
    %147 = vector.shape_cast %146 : vector<2xf32> to vector<2x1xf32>
    %148 = vector.broadcast %147 : vector<2x1xf32> to vector<2x128xf32>
    %149 = arith.cmpf oeq, %145, %148 : vector<2x128xf32>
    %c128_i32_49 = arith.constant 128 : i32
    %150 = vector.broadcast %c128_i32_49 : i32 to vector<2x128xi32>
    %151 = arith.select %149, %6, %150 : vector<2x128xi1>, vector<2x128xi32>
    %cst_50 = arith.constant dense<2147483647> : vector<2xi32>
    %152 = vector.multi_reduction <minsi>, %151, %cst_50 [1] : vector<2x128xi32> to vector<2xi32>
    %153 = vector.shape_cast %152 : vector<2xi32> to vector<2x1xi32>
    %154 = vector.broadcast %153 : vector<2x1xi32> to vector<2x128xi32>
    %155 = arith.cmpi eq, %6, %154 : vector<2x128xi32>
    %156 = arith.extui %155 : vector<2x128xi1> to vector<2x128xi32>
    %157 = arith.sitofp %156 : vector<2x128xi32> to vector<2x128xf32>
    %cst_51 = arith.constant dense<0.000000e+00> : vector<2x32xf32>
    %158 = tpu.matmul %157, %0, %cst_51 {dimension_numbers = #tpu.dot_dimension_numbers<[1], [0], [0], [1], [0, 0, 1, 1], [], []>} : vector<2x128xf32>, vector<128x32xf32>, vector<2x32xf32> -> vector<2x32xf32>
    %cst_52 = arith.constant dense<0.000000e+00> : vector<2x32xf32>
    %159 = tpu.matmul %142, %2, %cst_52 {dimension_numbers = #tpu.dot_dimension_numbers<[1], [0], [0], [1], [0, 0, 1, 1], [], []>} : vector<2x32xf32>, vector<32x32xf32>, vector<2x32xf32> -> vector<2x32xf32>
    %160 = arith.addf %158, %159 : vector<2x32xf32>
    %161 = vector.broadcast %1 : vector<1x32xf32> to vector<2x32xf32>
    %162 = arith.addf %160, %161 : vector<2x32xf32>
    %163 = math.tanh %162 : vector<2x32xf32>
    %cst_53 = arith.constant dense<0.000000e+00> : vector<2x128xf32>
    %164 = tpu.matmul %163, %3, %cst_53 {dimension_numbers = #tpu.dot_dimension_numbers<[1], [0], [0], [1], [0, 0, 1, 1], [], []>} : vector<2x32xf32>, vector<32x128xf32>, vector<2x128xf32> -> vector<2x128xf32>
    %165 = vector.broadcast %4 : vector<1x128xf32> to vector<2x128xf32>
    %166 = arith.addf %164, %165 : vector<2x128xf32>
    %167 = vector.shape_cast %19 : vector<2x128xf32> to vector<2x1x128xf32>
    %168 = vector.shape_cast %40 : vector<2x128xf32> to vector<2x1x128xf32>
    %169 = vector.shape_cast %61 : vector<2x128xf32> to vector<2x1x128xf32>
    %170 = vector.shape_cast %82 : vector<2x128xf32> to vector<2x1x128xf32>
    %171 = vector.shape_cast %103 : vector<2x128xf32> to vector<2x1x128xf32>
    %172 = vector.shape_cast %124 : vector<2x128xf32> to vector<2x1x128xf32>
    %173 = vector.shape_cast %145 : vector<2x128xf32> to vector<2x1x128xf32>
    %174 = vector.shape_cast %166 : vector<2x128xf32> to vector<2x1x128xf32>
    %175 = tpu.concatenate %167, %168, %169, %170, %171, %172, %173, %174 in 1 : vector<2x1x128xf32>, vector<2x1x128xf32>, vector<2x1x128xf32>, vector<2x1x128xf32>, vector<2x1x128xf32>, vector<2x1x128xf32>, vector<2x1x128xf32>, vector<2x1x128xf32> -> vector<2x8x128xf32>
    %c0_54 = arith.constant 0 : index
    %c0_55 = arith.constant 0 : index
    %c0_56 = arith.constant 0 : index
    %176 = vector.load %arg6[%c0_54, %c0_55, %c0_56] : memref<2x8x128xf32, #tpu.memory_space<vmem>>, vector<2x8x128xf32>
    tpu.vector_store %arg6[%c0_54, %c0_55, %c0_56], %175 {strides = array<i32>} : memref<2x8x128xf32, #tpu.memory_space<vmem>>, vector<2x8x128xf32>,
    return
  }
}

</mosaic_0001>

<bundles_post_ra>
// kernel: tpu_custom_call.1
= control target key start
LH: loop header
LB: loop body
LE: loop exit
PB: predicated region body
PF: predicated region fallthrough
CT: control target
= control target key end

     0   :  { %v3290_v3 = vmov 0.0|0.0   ;;  %vm3291_vm0 = vmmov 0   ;;  %v3292_v6 = vmov 0.0   ;;  %vm56_vm1 = vcmask 261120   ;;  %s3849_s0 = inlined_call_operand.vmem [shape: f32[128,32], index: 0, kind: input, shape index: {}]   ;;  %s3850_s1 = inlined_call_operand.vmem [shape: f32[1,32], index: 1, kind: input, shape index: {}]   ;;  %s3851_s2 = inlined_call_operand.vmem [shape: f32[32,32], index: 2, kind: input, shape index: {}]   ;;  %s3852_s3 = inlined_call_operand.vmem [shape: f32[32,128], index: 3, kind: input, shape index: {}]   ;;  %s3853_s4 = inlined_call_operand.vmem [shape: f32[1,128], index: 4, kind: input, shape index: {}]   ;;  %s3854_s5 = inlined_call_operand.vmem [shape: f32[2,32], index: 5, kind: input, shape index: {}]   ;;  %s3855_s6 = inlined_call_operand.hbm [shape: f32[2,8,128], index: 6, kind: output, shape index: {}]  }
   0x1   :  { %v41_v0 = vld [vmem:[%s3851_s2] sm:$0xff]  ;;  %v42_v1 = vld [vmem:[%s3851_s2 + $0x8] sm:$0xff]  ;;  %v43_v2 = vld [vmem:[%s3851_s2 + $0x10] sm:$0xff]  ;;  %2954 = vmatprep.subr.bf16.mxu1 %v3290_v3  ;;  %2506 = vmatprep.mubr.msk.f32.mxu1 %vm3291_vm0, %v3292_v6 }
   0x2   :  { %v3343_v4 = vpack.c.bf16 %v42_v1, %v41_v0  ;;  %v44_v5 = vld [vmem:[%s3851_s2 + $0x18] sm:$0xff]  ;;  %2984 = vmatprep.subr.bf16.mxu0 %v3290_v3  ;;  %2552 = vmatprep.mubr.msk.f32.mxu0 %vm3291_vm0, %v3292_v6  ;;  %v24_v8 = vld [vmem:[%s3849_s0] sm:$0xff]  ;;  %v25_v9 = vld [vmem:[%s3849_s0 + $0x8] sm:$0xff] }
   0x3   :  { %v3354_v7 = vpack.c.bf16 %v44_v5, %v43_v2  ;;  %v50_v10 = vld [vmem:[%s3854_s5] sm:$0x3]  ;;  %v3367_v11 = vpack.c.bf16 %v25_v9, %v24_v8 }
   0x4   :  { %2956 = vmatpush3.bf16.msra.mxu1 %v3343_v4 }
   0x5   :  { %2957 = vmatprep.subr.bf16.mxu1 %v3290_v3 }
   0x8   :  { %2959 = vmatpush3.bf16.msra.mxu1 %v3354_v7 }
   0x9   :  { %11 = vsyncpa [#allocation3], 0  ;;  %2960 = vmatprep.subr.bf16.mxu1 %v3290_v3  ;;  %v26_v12 = vld [vmem:[%s3849_s0 + $0x10] sm:$0xff]  ;;  %v27_v13 = vld [vmem:[%s3849_s0 + $0x18] sm:$0xff]  ;;  %v51_v30 = vlaneseq  ;;  %v3293_v35 = vmov 1.0   ;;  %vm287_vm3 = vcmask 1041408  }
   0xa   :  { %v3378_v14 = vpack.c.bf16 %v27_v13, %v26_v12  ;;  %v28_v15 = vld [vmem:[%s3849_s0 + $0x20] sm:$0xff]  ;;  %v29_v16 = vld [vmem:[%s3849_s0 + $0x28] sm:$0xff]  ;;  %v30_v18 = vld [vmem:[%s3849_s0 + $0x30] sm:$0xff] }
   0xb   :  { %2507 = vmatmul.mubr.msk.f32.vlgmr.msra.gmra.mrb[0].mxu1 %vm56_vm1, %v50_v10  ;;  %v3390_v17 = vpack.c.bf16 %v29_v16, %v28_v15  ;;  %v31_v19 = vld [vmem:[%s3849_s0 + $0x38] sm:$0xff]  ;;  %v32_v21 = vld [vmem:[%s3849_s0 + $0x40] sm:$0xff]  ;;  %v33_v22 = vld [vmem:[%s3849_s0 + $0x48] sm:$0xff]  ;;  %v3443_v34 = vand.u32 127, %v51_v30 }
   0xc   :  { %2962 = vmatpush3.bf16.msra.mxu1 %v3367_v11  ;;  %2541 = vmatprep.mubr.msk.f32.mxu1 %vm3291_vm0, %v3292_v6  ;;  %v3400_v20 = vpack.c.bf16 %v31_v19, %v30_v18  ;;  %v3410_v23 = vpack.c.bf16 %v33_v22, %v32_v21  ;;  %v34_v24 = vld [vmem:[%s3849_s0 + $0x50] sm:$0xff]  ;;  %v35_v25 = vld [vmem:[%s3849_s0 + $0x58] sm:$0xff]  ;;  %v36_v27 = vld [vmem:[%s3849_s0 + $0x60] sm:$0xff] }
   0xd   :  { %2963 = vmatprep.subr.bf16.mxu1 %v3290_v3  ;;  %v3420_v26 = vpack.c.bf16 %v35_v25, %v34_v24  ;;  %v37_v28 = vld [vmem:[%s3849_s0 + $0x68] sm:$0xff]  ;;  %v38_v31 = vld [vmem:[%s3849_s0 + $0x70] sm:$0xff]  ;;  %v39_v32 = vld [vmem:[%s3849_s0 + $0x78] sm:$0xff]  ;;  %vm53_vm2 = vcmp.eq.s32.totalorder %v3443_v34, 1 }
   0xe   :  { %v3430_v29 = vpack.c.bf16 %v37_v28, %v36_v27  ;;  %v3440_v33 = vpack.c.bf16 %v39_v32, %v38_v31  ;;  %v45_v36 = vld [vmem:[%s3852_s3] sm:$0xff]  ;;  %v46_v37 = vld [vmem:[%s3852_s3 + $0x8] sm:$0xff]  ;;  %v47_v38 = vld [vmem:[%s3852_s3 + $0x10] sm:$0xff] }
   0xf   :  { %v3461_v39 = vpack.c.bf16 %v46_v37, %v45_v36  ;;  %v48_v40 = vld [vmem:[%s3852_s3 + $0x18] sm:$0xff]  ;;  %v3479_v44 = vld [vmem:[%s3850_s1] ss:$0 sm:$0xff] }
  0x10   :  { %2965 = vmatpush3.bf16.msra.mxu1 %v3378_v14  ;;  %v3467_v41 = vpack.c.bf16 %v48_v40, %v47_v38  ;;  %v3511_v50 = vld [vmem:[%s3853_s4] ss:$0 sm:$0xff]  ;;  %s3295_s4 = smov [#allocation2]  }
  0x11   :  { %2966 = vmatprep.subr.bf16.mxu1 %v3290_v3  ;;  %2986 = vmatpush3.bf16.msra.mxu0 %v3461_v39  ;;  %s2237_s20 = sshll.u32 %s3295_s4, 4  ;;  %s2238_s20 = int_to_ptr.vmem [resolvable:$true] %s2237_s20 }
  0x12   :  { %2987 = vmatprep.subr.bf16.mxu0 %v3290_v3  ;;  %s3266_s21 = scalar_lea.vmem %s2238_s20, 256  ;;  %p3271_p1 = scmp.lt.s32.totalorder %s2238_s20, %s2238_s20 }
  0x13   :  { %p3267_p0 = scmp.ne.s32.totalorder %s2238_s20, %s3266_s21  ;;  %p3272_p2 = scmp.lt.s32.totalorder %s3266_s21, %s3266_s21 }
  0x14   :  { %2968 = vmatpush3.bf16.msra.mxu1 %v3390_v17 }
  0x15   :  { %2969 = vmatprep.subr.bf16.mxu1 %v3290_v3  ;;  %2989 = vmatpush3.bf16.msra.mxu0 %v3467_v41  ;;  %p3273_p3 = por %p3272_p2, %p3271_p1 }
  0x16   :  { %2990 = vmatprep.subr.bf16.mxu0 %v3290_v3 }
  0x17   :  { %p3274_p4 = pnand %p3273_p3, %p3267_p0 }
  0x18   :  { %2971 = vmatpush3.bf16.msra.mxu1 %v3400_v20 }
  0x19   :  { %2972 = vmatprep.subr.bf16.mxu1 %v3290_v3 }
  0x1c   :  { %2974 = vmatpush3.bf16.msra.mxu1 %v3410_v23 }
  0x1d   :  { %2975 = vmatprep.subr.bf16.mxu1 %v3290_v3 }
  0x20   :  { %2977 = vmatpush3.bf16.msra.mxu1 %v3420_v26 }
  0x21   :  { %2978 = vmatprep.subr.bf16.mxu1 %v3290_v3 }
  0x24   :  { %2980 = vmatpush3.bf16.msra.mxu1 %v3430_v29 }
  0x25   :  { %2981 = vmatprep.subr.bf16.mxu1 %v3290_v3 }
  0x28   :  { %2983 = vmatpush3.bf16.msra.mxu1 %v3440_v33 }
  0x29   :  { %3020 = vmatprep.subr.bf16.mxu1 %v3290_v3 }
  0x2b   :  { %2542 = vmatmul.mubr.msk.f32.vlgmr.msra.gmra.mrb[2].mxu1 %vm53_vm2, %v3293_v35 }
  0x2c   :  { %2609 = vmatprep.mubr.msk.f32.mxu1 %vm3291_vm0, %v3292_v6  ;;  %3022 = vmatpush3.bf16.msra.mxu1 %v3461_v39 }
  0x2d   :  { %3023 = vmatprep.subr.bf16.mxu1 %v3290_v3 }
  0x30   :  { %3025 = vmatpush3.bf16.msra.mxu1 %v3467_v41 }
  0x31   :  { %3026 = vmatprep.subr.bf16.mxu1 %v3290_v3 }
  0xde   :  { %v126_v42 = vpop.f32.mrb[0].mxu1 }
  0xdf   :  { %v2508_v43 = vpop.f32.mrb[1].mxu1 }
  0xfe   :  { %v196_v45 = vpop.f32.mrb[2].mxu1 }
  0xff   :  { %v197_v46 = vadd.f32 %v196_v45, %v126_v42  ;;  %v2543_v47 = vpop.f32.mrb[3].mxu1 }
 0x101   :  { %v206_v48 = vadd.f32 %v3479_v44, %v197_v46 }
 0x103   :  { %3250 = vtanh.f32 %v206_v48 }
 0x10d   :  { %v3251_v49 = vpop.eup %3250 }
 0x10e   :  { %2553 = vmatmul.mubr.msk.f32.vlgmr.msra.gmra.mrb[0].mxu0 %vm56_vm1, %v3251_v49 }
 0x10f   :  { %2992 = vmatpush3.bf16.msra.mxu0 %v3343_v4  ;;  %2563 = vmatprep.mubr.msk.f32.mxu0 %vm3291_vm0, %v3292_v6 }
 0x110   :  { %2993 = vmatprep.subr.bf16.mxu0 %v3290_v3 }
 0x113   :  { %2995 = vmatpush3.bf16.msra.mxu0 %v3354_v7 }
 0x114   :  { %2996 = vmatprep.subr.bf16.mxu0 %v3290_v3 }
 0x116   :  { %2564 = vmatmul.mubr.msk.f32.vlgmr.msra.gmra.mrb[2].mxu0 %vm56_vm1, %v3251_v49 }
 0x117   :  { %2998 = vmatpush3.bf16.msra.mxu0 %v3367_v11  ;;  %2598 = vmatprep.mubr.msk.f32.mxu0 %vm3291_vm0, %v3292_v6 }
 0x118   :  { %2999 = vmatprep.subr.bf16.mxu0 %v3290_v3 }
 0x11b   :  { %3001 = vmatpush3.bf16.msra.mxu0 %v3378_v14 }
 0x11c   :  { %3002 = vmatprep.subr.bf16.mxu0 %v3290_v3 }
 0x11f   :  { %3004 = vmatpush3.bf16.msra.mxu0 %v3390_v17 }
 0x120   :  { %3005 = vmatprep.subr.bf16.mxu0 %v3290_v3 }
 0x123   :  { %3007 = vmatpush3.bf16.msra.mxu0 %v3400_v20 }
 0x124   :  { %3008 = vmatprep.subr.bf16.mxu0 %v3290_v3 }
 0x127   :  { %3010 = vmatpush3.bf16.msra.mxu0 %v3410_v23 }
 0x128   :  { %3011 = vmatprep.subr.bf16.mxu0 %v3290_v3 }
 0x12b   :  { %3013 = vmatpush3.bf16.msra.mxu0 %v3420_v26 }
 0x12c   :  { %3014 = vmatprep.subr.bf16.mxu0 %v3290_v3 }
 0x12f   :  { %3016 = vmatpush3.bf16.msra.mxu0 %v3430_v29 }
 0x130   :  { %3017 = vmatprep.subr.bf16.mxu0 %v3290_v3 }
 0x133   :  { %3019 = vmatpush3.bf16.msra.mxu0 %v3440_v33 }
 0x134   :  { %3056 = vmatprep.subr.bf16.mxu0 %v3290_v3 }
 0x1e1   :  { %v283_v51 = vpop.f32.mrb[0].mxu0 }
 0x1e2   :  { %v3514_v52 = vadd.f32 %v3511_v50, %v283_v51  ;;  %v2554_v53 = vpop.f32.mrb[1].mxu0 }
 0x1e4   :  { %v288_v54 = vsel %vm287_vm3, %v3514_v52, -inf }
 0x1e5   :  { %289 = vmax.xlane.f32.xlu0 %v288_v54 }
 0x1e9   :  { %v377_v55 = vpop.f32.mrb[2].mxu0 }
 0x1ea   :  { %v2565_v56 = vpop.f32.mrb[3].mxu0 }
 0x272   :  { %v290_v57 = vpop.xlane.xlu0 %289 }
 0x273   :  { %vm291_vm4 = vcmp.eq.f32.partialorder %v3514_v52, %v290_v57 }
 0x274   :  { %v292_v58 = vsel %vm291_vm4, %v3443_v34, 128 }
 0x275   :  { %v293_v59 = vsel %vm287_vm3, %v292_v58, 2147483647 }
 0x276   :  { %v295_v60 = vshra.s32 %v293_v59, 16  ;;  %v294_v62 = vand.u32 65535, %v293_v59 }
 0x278   :  { %v297_v61 = vcvt.s32.f32 %v295_v60  ;;  %v296_v0 = vcvt.s32.f32 %v294_v62 }
 0x27a   :  { %298 = vmin.xlane.f32.xlu0 %v297_v61 }
 0x307   :  { %v299_v63 = vpop.xlane.xlu0 %298 }
 0x308   :  { %vm300_vm5 = vcmp.eq.f32.partialorder %v297_v61, %v299_v63  ;;  %v305_v2 = vcvt.f32.s32 %v299_v63 }
 0x309   :  { %v301_v1 = vsel %vm300_vm5, %v296_v0, inf }
 0x30a   :  { %302 = vmin.xlane.f32.xlu1 %v301_v1  ;;  %v306_v8 = vshll.u32 %v305_v2, 16 }
 0x397   :  { %v303_v5 = vpop.xlane.xlu1 %302 }
 0x398   :  { %v304_v9 = vcvt.f32.s32 %v303_v5 }
 0x39a   :  { %v307_v10 = vadd.s32 %v306_v8, %v304_v9 }
 0x39c   :  { %vm308_vm6 = vcmp.eq.s32.totalorder %v3443_v34, %v307_v10 }
 0x39d   :  { %2599 = vmatmul.mubr.msk.f32.vlgmr.msra.gmra.mrb[4].mxu0 %vm308_vm6, %v3293_v35 }
 0x39e   :  { %3058 = vmatpush3.bf16.msra.mxu0 %v3461_v39  ;;  %2666 = vmatprep.mubr.msk.f32.mxu0 %vm3291_vm0, %v3292_v6 }
 0x39f   :  { %3059 = vmatprep.subr.bf16.mxu0 %v3290_v3 }
 0x3a2   :  { %3061 = vmatpush3.bf16.msra.mxu0 %v3467_v41 }
 0x3a3   :  { %3062 = vmatprep.subr.bf16.mxu0 %v3290_v3 }
 0x470   :  { %v447_v12 = vpop.f32.mrb[4].mxu0 }
 0x471   :  { %v448_v13 = vadd.f32 %v447_v12, %v377_v55  ;;  %v2600_v15 = vpop.f32.mrb[5].mxu0 }
 0x473   :  { %v451_v16 = vadd.f32 %v3479_v44, %v448_v13 }
 0x475   :  { %3252 = vtanh.f32 %v451_v16 }
 0x47f   :  { %v3253_v18 = vpop.eup %3252 }
 0x480   :  { %2610 = vmatmul.mubr.msk.f32.vlgmr.msra.gmra.mrb[4].mxu1 %vm56_vm1, %v3253_v18 }
 0x481   :  { %3028 = vmatpush3.bf16.msra.mxu1 %v3343_v4  ;;  %2620 = vmatprep.mubr.msk.f32.mxu1 %vm3291_vm0, %v3292_v6 }
 0x482   :  { %3029 = vmatprep.subr.bf16.mxu1 %v3290_v3 }
 0x485   :  { %3031 = vmatpush3.bf16.msra.mxu1 %v3354_v7 }
 0x486   :  { %3032 = vmatprep.subr.bf16.mxu1 %v3290_v3 }
 0x488   :  { %2621 = vmatmul.mubr.msk.f32.vlgmr.msra.gmra.mrb[6].mxu1 %vm56_vm1, %v3253_v18 }
 0x489   :  { %3034 = vmatpush3.bf16.msra.mxu1 %v3367_v11  ;;  %2655 = vmatprep.mubr.msk.f32.mxu1 %vm3291_vm0, %v3292_v6 }
 0x48a   :  { %3035 = vmatprep.subr.bf16.mxu1 %v3290_v3 }
 0x48d   :  { %3037 = vmatpush3.bf16.msra.mxu1 %v3378_v14 }
 0x48e   :  { %3038 = vmatprep.subr.bf16.mxu1 %v3290_v3 }
 0x491   :  { %3040 = vmatpush3.bf16.msra.mxu1 %v3390_v17 }
 0x492   :  { %3041 = vmatprep.subr.bf16.mxu1 %v3290_v3 }
 0x495   :  { %3043 = vmatpush3.bf16.msra.mxu1 %v3400_v20 }
 0x496   :  { %3044 = vmatprep.subr.bf16.mxu1 %v3290_v3 }
 0x499   :  { %3046 = vmatpush3.bf16.msra.mxu1 %v3410_v23 }
 0x49a   :  { %3047 = vmatprep.subr.bf16.mxu1 %v3290_v3 }
 0x49d   :  { %3049 = vmatpush3.bf16.msra.mxu1 %v3420_v26 }
 0x49e   :  { %3050 = vmatprep.subr.bf16.mxu1 %v3290_v3 }
 0x4a1   :  { %3052 = vmatpush3.bf16.msra.mxu1 %v3430_v29 }
 0x4a2   :  { %3053 = vmatprep.subr.bf16.mxu1 %v3290_v3 }
 0x4a5   :  { %3055 = vmatpush3.bf16.msra.mxu1 %v3440_v33 }
 0x4a6   :  { %3092 = vmatprep.subr.bf16.mxu1 %v3290_v3 }
 0x553   :  { %v522_v19 = vpop.f32.mrb[4].mxu1 }
 0x554   :  { %v3557_v21 = vadd.f32 %v3511_v50, %v522_v19  ;;  %v2611_v22 = vpop.f32.mrb[5].mxu1 }
 0x556   :  { %v526_v24 = vsel %vm287_vm3, %v3557_v21, -inf }
 0x557   :  { %527 = vmax.xlane.f32.xlu1 %v526_v24 }
 0x55b   :  { %v615_v25 = vpop.f32.mrb[6].mxu1 }
 0x55c   :  { %v2622_v27 = vpop.f32.mrb[7].mxu1 }
 0x5e4   :  { %v528_v28 = vpop.xlane.xlu1 %527 }
 0x5e5   :  { %vm529_vm7 = vcmp.eq.f32.partialorder %v3557_v21, %v528_v28 }
 0x5e6   :  { %v530_v31 = vsel %vm529_vm7, %v3443_v34, 128 }
 0x5e7   :  { %v531_v32 = vsel %vm287_vm3, %v530_v31, 2147483647 }
 0x5e8   :  { %v533_v36 = vshra.s32 %v531_v32, 16  ;;  %v532_v38 = vand.u32 65535, %v531_v32 }
 0x5ea   :  { %v535_v37 = vcvt.s32.f32 %v533_v36  ;;  %v534_v42 = vcvt.s32.f32 %v532_v38 }
 0x5ec   :  { %536 = vmin.xlane.f32.xlu0 %v535_v37 }
 0x679   :  { %v537_v40 = vpop.xlane.xlu0 %536 }
 0x67a   :  { %vm538_vm8 = vcmp.eq.f32.partialorder %v535_v37, %v537_v40  ;;  %v543_v45 = vcvt.f32.s32 %v537_v40 }
 0x67b   :  { %v539_v43 = vsel %vm538_vm8, %v534_v42, inf }
 0x67c   :  { %540 = vmin.xlane.f32.xlu1 %v539_v43  ;;  %v544_v47 = vshll.u32 %v543_v45, 16 }
 0x709   :  { %v541_v46 = vpop.xlane.xlu1 %540 }
 0x70a   :  { %v542_v48 = vcvt.f32.s32 %v541_v46 }
 0x70c   :  { %v545_v49 = vadd.s32 %v544_v47, %v542_v48 }
 0x70e   :  { %vm546_vm9 = vcmp.eq.s32.totalorder %v3443_v34, %v545_v49 }
 0x70f   :  { %2656 = vmatmul.mubr.msk.f32.vlgmr.msra.gmra.mrb[8].mxu1 %vm546_vm9, %v3293_v35 }
 0x710   :  { %3094 = vmatpush3.bf16.msra.mxu1 %v3461_v39  ;;  %2723 = vmatprep.mubr.msk.f32.mxu1 %vm3291_vm0, %v3292_v6 }
 0x711   :  { %3095 = vmatprep.subr.bf16.mxu1 %v3290_v3 }
 0x714   :  { %3097 = vmatpush3.bf16.msra.mxu1 %v3467_v41 }
 0x715   :  { %3098 = vmatprep.subr.bf16.mxu1 %v3290_v3 }
 0x7e2   :  { %v685_v51 = vpop.f32.mrb[8].mxu1 }
 0x7e3   :  { %v686_v53 = vadd.f32 %v685_v51, %v615_v25  ;;  %v2657_v54 = vpop.f32.mrb[9].mxu1 }
 0x7e5   :  { %v689_v55 = vadd.f32 %v3479_v44, %v686_v53 }
 0x7e7   :  { %3254 = vtanh.f32 %v689_v55 }
 0x7f1   :  { %v3255_v56 = vpop.eup %3254 }
 0x7f2   :  { %2667 = vmatmul.mubr.msk.f32.vlgmr.msra.gmra.mrb[6].mxu0 %vm56_vm1, %v3255_v56 }
 0x7f3   :  { %3064 = vmatpush3.bf16.msra.mxu0 %v3343_v4  ;;  %2677 = vmatprep.mubr.msk.f32.mxu0 %vm3291_vm0, %v3292_v6 }
 0x7f4   :  { %3065 = vmatprep.subr.bf16.mxu0 %v3290_v3 }
 0x7f7   :  { %3067 = vmatpush3.bf16.msra.mxu0 %v3354_v7 }
 0x7f8   :  { %3068 = vmatprep.subr.bf16.mxu0 %v3290_v3 }
 0x7fa   :  { %2678 = vmatmul.mubr.msk.f32.vlgmr.msra.gmra.mrb[8].mxu0 %vm56_vm1, %v3255_v56 }
 0x7fb   :  { %3070 = vmatpush3.bf16.msra.mxu0 %v3367_v11  ;;  %2712 = vmatprep.mubr.msk.f32.mxu0 %vm3291_vm0, %v3292_v6 }
 0x7fc   :  { %3071 = vmatprep.subr.bf16.mxu0 %v3290_v3 }
 0x7ff   :  { %3073 = vmatpush3.bf16.msra.mxu0 %v3378_v14 }
 0x800   :  { %3074 = vmatprep.subr.bf16.mxu0 %v3290_v3 }
 0x803   :  { %3076 = vmatpush3.bf16.msra.mxu0 %v3390_v17 }
 0x804   :  { %3077 = vmatprep.subr.bf16.mxu0 %v3290_v3 }
 0x807   :  { %3079 = vmatpush3.bf16.msra.mxu0 %v3400_v20 }
 0x808   :  { %3080 = vmatprep.subr.bf16.mxu0 %v3290_v3 }
 0x80b   :  { %3082 = vmatpush3.bf16.msra.mxu0 %v3410_v23 }
 0x80c   :  { %3083 = vmatprep.subr.bf16.mxu0 %v3290_v3 }
 0x80f   :  { %3085 = vmatpush3.bf16.msra.mxu0 %v3420_v26 }
 0x810   :  { %3086 = vmatprep.subr.bf16.mxu0 %v3290_v3 }
 0x813   :  { %3088 = vmatpush3.bf16.msra.mxu0 %v3430_v29 }
 0x814   :  { %3089 = vmatprep.subr.bf16.mxu0 %v3290_v3 }
 0x817   :  { %3091 = vmatpush3.bf16.msra.mxu0 %v3440_v33 }
 0x818   :  { %3128 = vmatprep.subr.bf16.mxu0 %v3290_v3 }
 0x8c5   :  { %v760_v57 = vpop.f32.mrb[6].mxu0 }
 0x8c6   :  { %v3600_v58 = vadd.f32 %v3511_v50, %v760_v57  ;;  %v2668_v59 = vpop.f32.mrb[7].mxu0 }
 0x8c8   :  { %v764_v60 = vsel %vm287_vm3, %v3600_v58, -inf }
 0x8c9   :  { %765 = vmax.xlane.f32.xlu0 %v764_v60 }
 0x8cd   :  { %v853_v61 = vpop.f32.mrb[8].mxu0 }
 0x8ce   :  { %v2679_v62 = vpop.f32.mrb[9].mxu0 }
 0x956   :  { %v766_v63 = vpop.xlane.xlu0 %765 }
 0x957   :  { %vm767_vm10 = vcmp.eq.f32.partialorder %v3600_v58, %v766_v63 }
 0x958   :  { %v768_v0 = vsel %vm767_vm10, %v3443_v34, 128 }
 0x959   :  { %v769_v1 = vsel %vm287_vm3, %v768_v0, 2147483647 }
 0x95a   :  { %v771_v2 = vshra.s32 %v769_v1, 16  ;;  %v770_v8 = vand.u32 65535, %v769_v1 }
 0x95c   :  { %v773_v5 = vcvt.s32.f32 %v771_v2  ;;  %v772_v10 = vcvt.s32.f32 %v770_v8 }
 0x95e   :  { %774 = vmin.xlane.f32.xlu1 %v773_v5 }
 0x9eb   :  { %v775_v9 = vpop.xlane.xlu1 %774 }
 0x9ec   :  { %vm776_vm11 = vcmp.eq.f32.partialorder %v773_v5, %v775_v9  ;;  %v781_v13 = vcvt.f32.s32 %v775_v9 }
 0x9ed   :  { %v777_v12 = vsel %vm776_vm11, %v772_v10, inf  ;;  %vm2215_vm11 = vcmask 1042432  }
 0x9ee   :  { %778 = vmin.xlane.f32.xlu0 %v777_v12  ;;  %v782_v16 = vshll.u32 %v781_v13, 16 }
 0xa7b   :  { %v779_v15 = vpop.xlane.xlu0 %778 }
 0xa7c   :  { %v780_v18 = vcvt.f32.s32 %v779_v15 }
 0xa7e   :  { %v783_v19 = vadd.s32 %v782_v16, %v780_v18 }
 0xa80   :  { %vm784_vm12 = vcmp.eq.s32.totalorder %v3443_v34, %v783_v19 }
 0xa81   :  { %2713 = vmatmul.mubr.msk.f32.vlgmr.msra.gmra.mrb[10].mxu0 %vm784_vm12, %v3293_v35  ;;  %vm2218_vm12 = vcmask 1043456  }
 0xa82   :  { %3130 = vmatpush3.bf16.msra.mxu0 %v3461_v39  ;;  %2780 = vmatprep.mubr.msk.f32.mxu0 %vm3291_vm0, %v3292_v6 }
 0xa83   :  { %3131 = vmatprep.subr.bf16.mxu0 %v3290_v3 }
 0xa86   :  { %3133 = vmatpush3.bf16.msra.mxu0 %v3467_v41 }
 0xa87   :  { %3134 = vmatprep.subr.bf16.mxu0 %v3290_v3 }
 0xb54   :  { %v923_v22 = vpop.f32.mrb[10].mxu0 }
 0xb55   :  { %v924_v24 = vadd.f32 %v923_v22, %v853_v61  ;;  %v2714_v25 = vpop.f32.mrb[11].mxu0 }
 0xb57   :  { %v927_v27 = vadd.f32 %v3479_v44, %v924_v24 }
 0xb59   :  { %3256 = vtanh.f32 %v927_v27 }
 0xb63   :  { %v3257_v28 = vpop.eup %3256 }
 0xb64   :  { %2724 = vmatmul.mubr.msk.f32.vlgmr.msra.gmra.mrb[10].mxu1 %vm56_vm1, %v3257_v28 }
 0xb65   :  { %3100 = vmatpush3.bf16.msra.mxu1 %v3343_v4  ;;  %2734 = vmatprep.mubr.msk.f32.mxu1 %vm3291_vm0, %v3292_v6 }
 0xb66   :  { %3101 = vmatprep.subr.bf16.mxu1 %v3290_v3 }
 0xb69   :  { %3103 = vmatpush3.bf16.msra.mxu1 %v3354_v7 }
 0xb6a   :  { %3104 = vmatprep.subr.bf16.mxu1 %v3290_v3 }
 0xb6c   :  { %2735 = vmatmul.mubr.msk.f32.vlgmr.msra.gmra.mrb[12].mxu1 %vm56_vm1, %v3257_v28 }
 0xb6d   :  { %3106 = vmatpush3.bf16.msra.mxu1 %v3367_v11  ;;  %2769 = vmatprep.mubr.msk.f32.mxu1 %vm3291_vm0, %v3292_v6 }
 0xb6e   :  { %3107 = vmatprep.subr.bf16.mxu1 %v3290_v3 }
 0xb71   :  { %3109 = vmatpush3.bf16.msra.mxu1 %v3378_v14 }
 0xb72   :  { %3110 = vmatprep.subr.bf16.mxu1 %v3290_v3 }
 0xb75   :  { %3112 = vmatpush3.bf16.msra.mxu1 %v3390_v17 }
 0xb76   :  { %3113 = vmatprep.subr.bf16.mxu1 %v3290_v3 }
 0xb79   :  { %3115 = vmatpush3.bf16.msra.mxu1 %v3400_v20 }
 0xb7a   :  { %3116 = vmatprep.subr.bf16.mxu1 %v3290_v3 }
 0xb7d   :  { %3118 = vmatpush3.bf16.msra.mxu1 %v3410_v23 }
 0xb7e   :  { %3119 = vmatprep.subr.bf16.mxu1 %v3290_v3 }
 0xb81   :  { %3121 = vmatpush3.bf16.msra.mxu1 %v3420_v26 }
 0xb82   :  { %3122 = vmatprep.subr.bf16.mxu1 %v3290_v3 }
 0xb85   :  { %3124 = vmatpush3.bf16.msra.mxu1 %v3430_v29 }
 0xb86   :  { %3125 = vmatprep.subr.bf16.mxu1 %v3290_v3 }
 0xb89   :  { %3127 = vmatpush3.bf16.msra.mxu1 %v3440_v33 }
 0xb8a   :  { %3164 = vmatprep.subr.bf16.mxu1 %v3290_v3 }
 0xc37   :  { %v998_v31 = vpop.f32.mrb[10].mxu1 }
 0xc38   :  { %v3643_v32 = vadd.f32 %v3511_v50, %v998_v31  ;;  %v2725_v36 = vpop.f32.mrb[11].mxu1 }
 0xc3a   :  { %v1002_v37 = vsel %vm287_vm3, %v3643_v32, -inf }
 0xc3b   :  { %1003 = vmax.xlane.f32.xlu1 %v1002_v37 }
 0xc3f   :  { %v1091_v38 = vpop.f32.mrb[12].mxu1 }
 0xc40   :  { %v2736_v40 = vpop.f32.mrb[13].mxu1 }
 0xcc8   :  { %v1004_v42 = vpop.xlane.xlu1 %1003 }
 0xcc9   :  { %vm1005_vm13 = vcmp.eq.f32.partialorder %v3643_v32, %v1004_v42 }
 0xcca   :  { %v1006_v43 = vsel %vm1005_vm13, %v3443_v34, 128  ;;  %vm2221_vm13 = vcmask 1044480  }
 0xccb   :  { %v1007_v45 = vsel %vm287_vm3, %v1006_v43, 2147483647 }
 0xccc   :  { %v1009_v46 = vshra.s32 %v1007_v45, 16  ;;  %v1008_v48 = vand.u32 65535, %v1007_v45 }
 0xcce   :  { %v1011_v47 = vcvt.s32.f32 %v1009_v46  ;;  %v1010_v51 = vcvt.s32.f32 %v1008_v48 }
 0xcd0   :  { %1012 = vmin.xlane.f32.xlu0 %v1011_v47 }
 0xd5d   :  { %v1013_v49 = vpop.xlane.xlu0 %1012 }
 0xd5e   :  { %vm1014_vm14 = vcmp.eq.f32.partialorder %v1011_v47, %v1013_v49  ;;  %v1019_v54 = vcvt.f32.s32 %v1013_v49 }
 0xd5f   :  { %v1015_v53 = vsel %vm1014_vm14, %v1010_v51, inf  ;;  %vm2224_vm14 = vcmask 1045504  }
 0xd60   :  { %1016 = vmin.xlane.f32.xlu1 %v1015_v53  ;;  %v1020_v56 = vshll.u32 %v1019_v54, 16 }
 0xded   :  { %v1017_v55 = vpop.xlane.xlu1 %1016 }
 0xdee   :  { %v1018_v57 = vcvt.f32.s32 %v1017_v55 }
 0xdf0   :  { %v1021_v59 = vadd.s32 %v1020_v56, %v1018_v57 }
 0xdf2   :  { %vm1022_vm15 = vcmp.eq.s32.totalorder %v3443_v34, %v1021_v59 }
 0xdf3   :  { %2770 = vmatmul.mubr.msk.f32.vlgmr.msra.gmra.mrb[14].mxu1 %vm1022_vm15, %v3293_v35  ;;  %vm2227_vm15 = vcmask 1046528  }
 0xdf4   :  { %3166 = vmatpush3.bf16.msra.mxu1 %v3461_v39  ;;  %2837 = vmatprep.mubr.msk.f32.mxu1 %vm3291_vm0, %v3292_v6 }
 0xdf5   :  { %3167 = vmatprep.subr.bf16.mxu1 %v3290_v3 }
 0xdf8   :  { %3169 = vmatpush3.bf16.msra.mxu1 %v3467_v41 }
 0xdf9   :  { %3170 = vmatprep.subr.bf16.mxu1 %v3290_v3 }
 0xec6   :  { %v1161_v60 = vpop.f32.mrb[14].mxu1 }
 0xec7   :  { %v1162_v61 = vadd.f32 %v1161_v60, %v1091_v38  ;;  %v2771_v62 = vpop.f32.mrb[15].mxu1 }
 0xec9   :  { %v1165_v63 = vadd.f32 %v3479_v44, %v1162_v61 }
 0xecb   :  { %3258 = vtanh.f32 %v1165_v63 }
 0xed5   :  { %v3259_v0 = vpop.eup %3258 }
 0xed6   :  { %2781 = vmatmul.mubr.msk.f32.vlgmr.msra.gmra.mrb[12].mxu0 %vm56_vm1, %v3259_v0 }
 0xed7   :  { %3136 = vmatpush3.bf16.msra.mxu0 %v3343_v4  ;;  %2791 = vmatprep.mubr.msk.f32.mxu0 %vm3291_vm0, %v3292_v6 }
 0xed8   :  { %3137 = vmatprep.subr.bf16.mxu0 %v3290_v3 }
 0xedb   :  { %3139 = vmatpush3.bf16.msra.mxu0 %v3354_v7 }
 0xedc   :  { %3140 = vmatprep.subr.bf16.mxu0 %v3290_v3 }
 0xede   :  { %2792 = vmatmul.mubr.msk.f32.vlgmr.msra.gmra.mrb[14].mxu0 %vm56_vm1, %v3259_v0 }
 0xedf   :  { %3142 = vmatpush3.bf16.msra.mxu0 %v3367_v11  ;;  %2826 = vmatprep.mubr.msk.f32.mxu0 %vm3291_vm0, %v3292_v6 }
 0xee0   :  { %3143 = vmatprep.subr.bf16.mxu0 %v3290_v3 }
 0xee3   :  { %3145 = vmatpush3.bf16.msra.mxu0 %v3378_v14 }
 0xee4   :  { %3146 = vmatprep.subr.bf16.mxu0 %v3290_v3 }
 0xee7   :  { %3148 = vmatpush3.bf16.msra.mxu0 %v3390_v17 }
 0xee8   :  { %3149 = vmatprep.subr.bf16.mxu0 %v3290_v3 }
 0xeeb   :  { %3151 = vmatpush3.bf16.msra.mxu0 %v3400_v20 }
 0xeec   :  { %3152 = vmatprep.subr.bf16.mxu0 %v3290_v3 }
 0xeef   :  { %3154 = vmatpush3.bf16.msra.mxu0 %v3410_v23 }
 0xef0   :  { %3155 = vmatprep.subr.bf16.mxu0 %v3290_v3 }
 0xef3   :  { %3157 = vmatpush3.bf16.msra.mxu0 %v3420_v26 }
 0xef4   :  { %3158 = vmatprep.subr.bf16.mxu0 %v3290_v3 }
 0xef7   :  { %3160 = vmatpush3.bf16.msra.mxu0 %v3430_v29 }
 0xef8   :  { %3161 = vmatprep.subr.bf16.mxu0 %v3290_v3 }
 0xefb   :  { %3163 = vmatpush3.bf16.msra.mxu0 %v3440_v33 }
 0xefc   :  { %3200 = vmatprep.subr.bf16.mxu0 %v3290_v3 }
 0xfa9   :  { %v1236_v1 = vpop.f32.mrb[12].mxu0 }
 0xfaa   :  { %v3686_v2 = vadd.f32 %v3511_v50, %v1236_v1  ;;  %v2782_v5 = vpop.f32.mrb[13].mxu0 }
 0xfac   :  { %v1240_v8 = vsel %vm287_vm3, %v3686_v2, -inf }
 0xfad   :  { %1241 = vmax.xlane.f32.xlu0 %v1240_v8 }
 0xfb1   :  { %v1329_v9 = vpop.f32.mrb[14].mxu0 }
 0xfb2   :  { %v2793_v10 = vpop.f32.mrb[15].mxu0 }
0x103a   :  { %v1242_v12 = vpop.xlane.xlu0 %1241 }
0x103b   :  { %vm1243_vm2 = vcmp.eq.f32.partialorder %v3686_v2, %v1242_v12 }
0x103c   :  { %v1244_v13 = vsel %vm1243_vm2, %v3443_v34, 128 }
0x103d   :  { %v1245_v15 = vsel %vm287_vm3, %v1244_v13, 2147483647 }
0x103e   :  { %v1247_v16 = vshra.s32 %v1245_v15, 16  ;;  %v1246_v19 = vand.u32 65535, %v1245_v15 }
0x1040   :  { %v1249_v18 = vcvt.s32.f32 %v1247_v16  ;;  %v1248_v24 = vcvt.s32.f32 %v1246_v19 }
0x1042   :  { %1250 = vmin.xlane.f32.xlu1 %v1249_v18 }
0x10cf   :  { %v1251_v22 = vpop.xlane.xlu1 %1250 }
0x10d0   :  { %vm1252_vm4 = vcmp.eq.f32.partialorder %v1249_v18, %v1251_v22  ;;  %v1257_v27 = vcvt.f32.s32 %v1251_v22 }
0x10d1   :  { %v1253_v25 = vsel %vm1252_vm4, %v1248_v24, inf }
0x10d2   :  { %1254 = vmin.xlane.f32.xlu0 %v1253_v25  ;;  %v1258_v31 = vshll.u32 %v1257_v27, 16 }
0x115f   :  { %v1255_v28 = vpop.xlane.xlu0 %1254 }
0x1160   :  { %v1256_v36 = vcvt.f32.s32 %v1255_v28 }
0x1162   :  { %v1259_v37 = vadd.s32 %v1258_v31, %v1256_v36 }
0x1164   :  { %vm1260_vm5 = vcmp.eq.s32.totalorder %v3443_v34, %v1259_v37 }
0x1165   :  { %2827 = vmatmul.mubr.msk.f32.vlgmr.msra.gmra.mrb[16].mxu0 %vm1260_vm5, %v3293_v35 }
0x1166   :  { %3202 = vmatpush3.bf16.msra.mxu0 %v3461_v39  ;;  %2894 = vmatprep.mubr.msk.f32.mxu0 %vm3291_vm0, %v3292_v6 }
0x1167   :  { %3203 = vmatprep.subr.bf16.mxu0 %v3290_v3 }
0x116a   :  { %3205 = vmatpush3.bf16.msra.mxu0 %v3467_v41 }
0x116b   :  { %3206 = vmatprep.subr.bf16.mxu0 %v3290_v3 }
0x1238   :  { %v1399_v38 = vpop.f32.mrb[16].mxu0 }
0x1239   :  { %v1400_v40 = vadd.f32 %v1399_v38, %v1329_v9  ;;  %v2828_v42 = vpop.f32.mrb[17].mxu0 }
0x123b   :  { %v1403_v43 = vadd.f32 %v3479_v44, %v1400_v40  ;;  %v3294_v40 = vmov 1966171168  }
0x123c   :  { %v1956_v42 = vunpack.c.l.s4 %v3294_v40 }
0x123d   :  { %3260 = vtanh.f32 %v1403_v43 }
0x123e   :  { %v1957_v43 = vunpack.c.0.s8 %v1956_v42 }
0x1247   :  { %v3261_v45 = vpop.eup %3260 }
0x1248   :  { %2838 = vmatmul.mubr.msk.f32.vlgmr.msra.gmra.mrb[16].mxu1 %vm56_vm1, %v3261_v45 }
0x1249   :  { %3172 = vmatpush3.bf16.msra.mxu1 %v3343_v4  ;;  %2848 = vmatprep.mubr.msk.f32.mxu1 %vm3291_vm0, %v3292_v6 }
0x124a   :  { %3173 = vmatprep.subr.bf16.mxu1 %v3290_v3 }
0x124d   :  { %3175 = vmatpush3.bf16.msra.mxu1 %v3354_v7 }
0x124e   :  { %3176 = vmatprep.subr.bf16.mxu1 %v3290_v3 }
0x1250   :  { %2849 = vmatmul.mubr.msk.f32.vlgmr.msra.gmra.mrb[18].mxu1 %vm56_vm1, %v3261_v45  ;;  %v1959_v45 = vshrl.u32 %v51_v30, 7 }
0x1251   :  { %3178 = vmatpush3.bf16.msra.mxu1 %v3367_v11  ;;  %2883 = vmatprep.mubr.msk.f32.mxu1 %vm3291_vm0, %v3292_v6 }
0x1252   :  { %3179 = vmatprep.subr.bf16.mxu1 %v3290_v3 }
0x1255   :  { %3181 = vmatpush3.bf16.msra.mxu1 %v3378_v14 }
0x1256   :  { %3182 = vmatprep.subr.bf16.mxu1 %v3290_v3 }
0x1259   :  { %3184 = vmatpush3.bf16.msra.mxu1 %v3390_v17 }
0x125a   :  { %3185 = vmatprep.subr.bf16.mxu1 %v3290_v3 }
0x125d   :  { %3187 = vmatpush3.bf16.msra.mxu1 %v3400_v20 }
0x125e   :  { %3188 = vmatprep.subr.bf16.mxu1 %v3290_v3 }
0x1261   :  { %3190 = vmatpush3.bf16.msra.mxu1 %v3410_v23 }
0x1262   :  { %3191 = vmatprep.subr.bf16.mxu1 %v3290_v3 }
0x1265   :  { %3193 = vmatpush3.bf16.msra.mxu1 %v3420_v26 }
0x1266   :  { %3194 = vmatprep.subr.bf16.mxu1 %v3290_v3 }
0x1269   :  { %3196 = vmatpush3.bf16.msra.mxu1 %v3430_v29 }
0x126a   :  { %3197 = vmatprep.subr.bf16.mxu1 %v3290_v3 }
0x126d   :  { %3199 = vmatpush3.bf16.msra.mxu1 %v3440_v33 }
0x126e   :  { %3236 = vmatprep.subr.bf16.mxu1 %v3290_v3 }
0x131b   :  { %v1474_v46 = vpop.f32.mrb[16].mxu1 }
0x131c   :  { %v3729_v47 = vadd.f32 %v3511_v50, %v1474_v46  ;;  %v2839_v48 = vpop.f32.mrb[17].mxu1  ;;  %v3778_v46 = vsub.s32 %v1957_v43, %v1959_v45 }
0x131e   :  { %v1478_v49 = vsel %vm287_vm3, %v3729_v47, -inf  ;;  %v2009_v48 = vrot.slane %v3600_v58, %v3778_v46  ;;  %v2055_v30 = vrot.slane %v3686_v2, %v3778_v46 }
0x131f   :  { %1479 = vmax.xlane.f32.xlu1 %v1478_v49  ;;  %v2032_v49 = vrot.slane %v3643_v32, %v3778_v46 }
0x1320   :  { %v2017_v58 = vrot.slane %v2009_v48, %v3778_v46 }
0x1323   :  { %v1567_v51 = vpop.f32.mrb[18].mxu1 }
0x1324   :  { %v2850_v53 = vpop.f32.mrb[19].mxu1 }
0x1325   :  { %v3789_v53 = vsub.s32 0, %v1959_v45 }
0x13ac   :  { %v1480_v54 = vpop.xlane.xlu1 %1479 }
0x13ad   :  { %vm1481_vm6 = vcmp.eq.f32.partialorder %v3729_v47, %v1480_v54 }
0x13ae   :  { %v1482_v55 = vsel %vm1481_vm6, %v3443_v34, 128 }
0x13af   :  { %v1483_v56 = vsel %vm287_vm3, %v1482_v55, 2147483647  ;;  %v2010_v55 = vcombine.high %v2009_v48, %v2009_v48 }
0x13b0   :  { %v1485_v57 = vshra.s32 %v1483_v56, 16  ;;  %v1484_v60 = vand.u32 65535, %v1483_v56 }
0x13b2   :  { %v1487_v59 = vcvt.s32.f32 %v1485_v57  ;;  %v1486_v62 = vcvt.s32.f32 %v1484_v60  ;;  %v2033_v57 = vcombine.high %v2032_v49, %v2032_v49  ;;  %v2056_v60 = vcombine.high %v2055_v30, %v2055_v30 }
0x13b4   :  { %1488 = vmin.xlane.f32.xlu0 %v1487_v59 }
0x1441   :  { %v1489_v61 = vpop.xlane.xlu0 %1488 }
0x1442   :  { %vm1490_vm7 = vcmp.eq.f32.partialorder %v1487_v59, %v1489_v61  ;;  %v1495_v0 = vcvt.f32.s32 %v1489_v61  ;;  %v2040_v59 = vrot.slane %v2032_v49, %v3778_v46 }
0x1443   :  { %v1491_v63 = vsel %vm1490_vm7, %v1486_v62, inf }
0x1444   :  { %1492 = vmin.xlane.f32.xlu1 %v1491_v63  ;;  %v1496_v5 = vshll.u32 %v1495_v0, 16  ;;  %v2153_v63 = vrot.slane %v2017_v58, %v3789_v53  ;;  %v2063_v0 = vrot.slane %v2055_v30, %v3778_v46 }
0x14d1   :  { %v1493_v1 = vpop.xlane.xlu1 %1492 }
0x14d2   :  { %v1494_v8 = vcvt.f32.s32 %v1493_v1 }
0x14d4   :  { %v1497_v9 = vadd.s32 %v1496_v5, %v1494_v8  ;;  %v2047_v8 = vrot.slane %v2033_v57, %v3778_v46 }
0x14d6   :  { %vm1498_vm8 = vcmp.eq.s32.totalorder %v3443_v34, %v1497_v9 }
0x14d7   :  { %2884 = vmatmul.mubr.msk.f32.vlgmr.msra.gmra.mrb[20].mxu1 %vm1498_vm8, %v3293_v35 }
0x14d8   :  { %3238 = vmatpush3.bf16.msra.mxu1 %v3461_v39  ;;  %2951 = vmatprep.mubr.msk.f32.mxu1 %vm3291_vm0, %v3292_v6 }
0x14d9   :  { %3239 = vmatprep.subr.bf16.mxu1 %v3290_v3 }
0x14dc   :  { %3241 = vmatpush3.bf16.msra.mxu1 %v3467_v41 }
0x15aa   :  { %v1637_v10 = vpop.f32.mrb[20].mxu1 }
0x15ab   :  { %v1638_v12 = vadd.f32 %v1637_v10, %v1567_v51  ;;  %v2885_v13 = vpop.f32.mrb[21].mxu1 }
0x15ac   :  { %v2070_v13 = vrot.slane %v2056_v60, %v3778_v46 }
0x15ad   :  { %v1641_v15 = vadd.f32 %v3479_v44, %v1638_v12  ;;  %v2163_v12 = vrot.slane %v2040_v59, %v3789_v53 }
0x15af   :  { %3262 = vtanh.f32 %v1641_v15 }
0x15b9   :  { %v3263_v16 = vpop.eup %3262 }
0x15ba   :  { %2895 = vmatmul.mubr.msk.f32.vlgmr.msra.gmra.mrb[18].mxu0 %vm56_vm1, %v3263_v16 }
0x15bb   :  { %3208 = vmatpush3.bf16.msra.mxu0 %v3343_v4  ;;  %2905 = vmatprep.mubr.msk.f32.mxu0 %vm3291_vm0, %v3292_v6 }
0x15bc   :  { %3209 = vmatprep.subr.bf16.mxu0 %v3290_v3 }
0x15bf   :  { %3211 = vmatpush3.bf16.msra.mxu0 %v3354_v7 }
0x15c0   :  { %3212 = vmatprep.subr.bf16.mxu0 %v3290_v3 }
0x15c2   :  { %2906 = vmatmul.mubr.msk.f32.vlgmr.msra.gmra.mrb[20].mxu0 %vm56_vm1, %v3263_v16 }
0x15c3   :  { %3214 = vmatpush3.bf16.msra.mxu0 %v3367_v11  ;;  %2940 = vmatprep.mubr.msk.f32.mxu0 %vm3291_vm0, %v3292_v6 }
0x15c4   :  { %3215 = vmatprep.subr.bf16.mxu0 %v3290_v3 }
0x15c7   :  { %3217 = vmatpush3.bf16.msra.mxu0 %v3378_v14 }
0x15c8   :  { %3218 = vmatprep.subr.bf16.mxu0 %v3290_v3 }
0x15cb   :  { %3220 = vmatpush3.bf16.msra.mxu0 %v3390_v17 }
0x15cc   :  { %3221 = vmatprep.subr.bf16.mxu0 %v3290_v3 }
0x15cf   :  { %3223 = vmatpush3.bf16.msra.mxu0 %v3400_v20 }
0x15d0   :  { %3224 = vmatprep.subr.bf16.mxu0 %v3290_v3 }
0x15d3   :  { %3226 = vmatpush3.bf16.msra.mxu0 %v3410_v23 }
0x15d4   :  { %3227 = vmatprep.subr.bf16.mxu0 %v3290_v3 }
0x15d7   :  { %3229 = vmatpush3.bf16.msra.mxu0 %v3420_v26 }
0x15d8   :  { %3230 = vmatprep.subr.bf16.mxu0 %v3290_v3 }
0x15db   :  { %3232 = vmatpush3.bf16.msra.mxu0 %v3430_v29 }
0x15dc   :  { %3233 = vmatprep.subr.bf16.mxu0 %v3290_v3 }
0x15df   :  { %3235 = vmatpush3.bf16.msra.mxu0 %v3440_v33 }
0x168d   :  { %v1712_v4 = vpop.f32.mrb[18].mxu0 }
0x168e   :  { %v1713_v6 = vadd.f32 %v3511_v50, %v1712_v4  ;;  %v2896_v7 = vpop.f32.mrb[19].mxu0 }
0x1690   :  { %v1716_v11 = vsel %vm287_vm3, %v1713_v6, -inf }
0x1691   :  { %1717 = vmax.xlane.f32.xlu0 %v1716_v11 }
0x1695   :  { %v1805_v14 = vpop.f32.mrb[20].mxu0 }
0x1696   :  { %v2907_v17 = vpop.f32.mrb[21].mxu0 }
0x171e   :  { %v1718_v20 = vpop.xlane.xlu0 %1717 }
0x171f   :  { %vm1719_vm0 = vcmp.eq.f32.partialorder %v1713_v6, %v1718_v20  ;;  %v2173_v20 = vrot.slane %v2063_v0, %v3789_v53 }
0x1720   :  { %v1720_v23 = vsel %vm1719_vm0, %v3443_v34, 128 }
0x1721   :  { %v1721_v26 = vsel %vm287_vm3, %v1720_v23, 2147483647 }
0x1722   :  { %v1723_v29 = vshra.s32 %v1721_v26, 16  ;;  %v1722_v3 = vand.u32 65535, %v1721_v26  ;;  %v2167_v26 = vrot.slane %v2047_v8, %v3789_v53 }
0x1724   :  { %v1725_v39 = vcvt.s32.f32 %v1723_v29  ;;  %v1724_v41 = vcvt.s32.f32 %v1722_v3 }
0x1726   :  { %1726 = vmin.xlane.f32.xlu1 %v1725_v39 }
0x17b3   :  { %v1727_v33 = vpop.xlane.xlu1 %1726 }
0x17b4   :  { %vm1728_vm9 = vcmp.eq.f32.partialorder %v1725_v39, %v1727_v33  ;;  %v1733_v19 = vcvt.f32.s32 %v1727_v33 }
0x17b5   :  { %v1729_v18 = vsel %vm1728_vm9, %v1724_v41, inf }
0x17b6   :  { %1730 = vmin.xlane.f32.xlu0 %v1729_v18  ;;  %v1734_v24 = vshll.u32 %v1733_v19, 16 }
0x1843   :  { %v1731_v22 = vpop.xlane.xlu0 %1730 }
0x1844   :  { %v1732_v25 = vcvt.f32.s32 %v1731_v22 }
0x1846   :  { %v1735_v27 = vadd.s32 %v1734_v24, %v1732_v25 }
0x1848   :  { %vm1736_vm10 = vcmp.eq.s32.totalorder %v3443_v34, %v1735_v27  ;;  %v1986_v34 = vrot.slane %v3557_v21, %v3778_v46  ;;  %v2078_v21 = vrot.slane %v3729_v47, %v3778_v46  ;;  %v2024_v47 = vrot.slane %v2010_v55, %v3778_v46 }
0x1849   :  { %2941 = vmatmul.mubr.msk.f32.vlgmr.msra.gmra.mrb[22].mxu0 %vm1736_vm10, %v3293_v35 }
0x184a   :  { %v1987_v35 = vcombine.high %v1986_v34, %v1986_v34  ;;  %v1994_v51 = vrot.slane %v1986_v34, %v3778_v46  ;;  %v2079_v62 = vcombine.high %v2078_v21, %v2078_v21  ;;  %v2086_v9 = vrot.slane %v2078_v21, %v3778_v46 }
0x184c   :  { %v2001_v54 = vrot.slane %v1987_v35, %v3778_v46  ;;  %v2143_v32 = vrot.slane %v1994_v51, %v3789_v53  ;;  %v2183_v29 = vrot.slane %v2086_v9, %v3789_v53 }
0x184e   :  { %v2147_v2 = vrot.slane %v2001_v54, %v3789_v53 }
0x191c   :  { %v1875_v28 = vpop.f32.mrb[22].mxu0 }
0x191d   :  { %v1876_v31 = vadd.f32 %v1875_v28, %v1805_v14  ;;  %v2942_v36 = vpop.f32.mrb[23].mxu0  ;;  %v2157_v14 = vrot.slane %v2024_v47, %v3789_v53 }
0x191f   :  { %v1879_v37 = vadd.f32 %v3479_v44, %v1876_v31  ;;  %v1961_v44 = vrot.slane %v3514_v52, %v3778_v46  ;;  %v2101_v52 = vrot.slane %v1713_v6, %v3778_v46  ;;  %v2093_v6 = vrot.slane %v2079_v62, %v3778_v46 }
0x1921   :  { %3264 = vtanh.f32 %v1879_v37  ;;  %v1962_v56 = vcombine.high %v1961_v44, %v1961_v44  ;;  %v1969_v61 = vrot.slane %v1961_v44, %v3778_v46  ;;  %v2102_v1 = vcombine.high %v2101_v52, %v2101_v52 }
0x1922   :  { %v2109_v15 = vrot.slane %v2101_v52, %v3778_v46  ;;  %v2187_v41 = vrot.slane %v2093_v6, %v3789_v53 }
0x1923   :  { %v1976_v5 = vrot.slane %v1962_v56, %v3778_v46  ;;  %v2116_v23 = vrot.slane %v2102_v1, %v3778_v46 }
0x1924   :  { %v2193_v33 = vrot.slane %v2109_v15, %v3789_v53 }
0x1925   :  { %v2197_v25 = vrot.slane %v2116_v23, %v3789_v53 }
0x192b   :  { %v3265_v38 = vpop.eup %3264 }
0x192c   :  { %2952 = vmatmul.mubr.msk.f32.vlgmr.msra.gmra.mrb[22].mxu1 %vm56_vm1, %v3265_v38  ;;  %vm2210_vm1 = vcmask 1040384  }
0x192d   :  { %v2211_v10 = vsel %vm2210_vm1, %v1969_v61, %v2143_v32  ;;  %v2212_v4 = vsel %vm2210_vm1, %v1976_v5, %v2147_v2 }
0x192e   :  { %v2213_v17 = vsel %vm287_vm3, %v2211_v10, %v2153_v63  ;;  %v2214_v22 = vsel %vm287_vm3, %v2212_v4, %v2157_v14 }
0x192f   :  { %v2216_v3 = vsel %vm2215_vm11, %v2213_v17, %v2163_v12  ;;  %v2217_v27 = vsel %vm2215_vm11, %v2214_v22, %v2167_v26 }
0x1930   :  { %v2219_v24 = vsel %vm2218_vm12, %v2216_v3, %v2173_v20 }
0x1931   :  { %v2222_v36 = vsel %vm2221_vm13, %v2219_v24, %v2183_v29 }
0x1932   :  { %v2225_v38 = vsel %vm2224_vm14, %v2222_v36, %v2193_v33 }
0x19ff   :  { %v1950_v16 = vpop.f32.mrb[22].mxu1 }
0x1a00   :  { %v1951_v7 = vadd.f32 %v3511_v50, %v1950_v16  ;;  %v2953_v11 = vpop.f32.mrb[23].mxu1  ;;  %v2177_v50 = vrot.slane %v2070_v13, %v3789_v53 }
0x1a02   :  { %v2124_v39 = vrot.slane %v1951_v7, %v3778_v46  ;;  %v2220_v37 = vsel %vm2218_vm12, %v2217_v27, %v2177_v50 }
0x1a03   :  { %v2223_v42 = vsel %vm2221_vm13, %v2220_v37, %v2187_v41 }
0x1a04   :  { %v2125_v18 = vcombine.high %v2124_v39, %v2124_v39  ;;  %v2132_v19 = vrot.slane %v2124_v39, %v3778_v46  ;;  %v2226_v45 = vsel %vm2224_vm14, %v2223_v42, %v2197_v25 }
0x1a06   :  { %v2139_v28 = vrot.slane %v2125_v18, %v3778_v46  ;;  %v2203_v31 = vrot.slane %v2132_v19, %v3789_v53 }
0x1a08   :  { %v2207_v40 = vrot.slane %v2139_v28, %v3789_v53  ;;  %v2228_v43 = vsel %vm2227_vm15, %v2225_v38, %v2203_v31 }
0x1a09   :  { %2230 = vst [vmem:[#allocation2] sm:$0xff] %v2228_v43 }
0x1a0a   :  { %v2229_v46 = vsel %vm2227_vm15, %v2226_v45, %v2207_v40 }
0x1a0b   :  { %2231 = vst [vmem:[#allocation2 + $0x8] sm:$0xff] %v2229_v46 }
0x1a0c   :  { %3277 = shalt.err (!%p3274_p4)
}
0x1a0d   :  { %s3278_s24 = scalar_lea.hbm %s3855_s6, 256 }
0x1a0e   :  { %p3279_p5 = scmp.ne.s32.totalorder %s3855_s6, %s3278_s24  ;;  %p3282_p6 = scmp.lt.u32.totalorder %s3278_s24, %s3855_s6 }
0x1a10   :  { %p3284_p7 = pnand %p3282_p6, %p3279_p5 }
0x1a12   :  { %3287 = shalt.err (!%p3284_p7)
}
0x1a13   :  { %s3296_s29 = smov 128   ;;  %s3297_s30 = smov 8  }
0x1a14   :  { %2243 = dma.vmem_to_hbm [thread:$0]  %s2238_s20, 256, %s3855_s6, [#allocation3], %s3296_s29, %s3296_s29, %s3297_s30  }
0x1a15   :  { %3288 = dma.done.wait [#allocation3], 256  }
0x1a16   :  { %3289 = vsyncadd [#allocation3], 4294967040 }
0x1a17   :  { %2247 = vsyncpa [#allocation3], 1 }

</bundles_post_ra>
